<compile_context>
chip_gen: v5e
topology: v5e:2x2
jax: 0.10.0
libtpu: 0.0.40
codegen_flags: <defaults>
</compile_context>

<pallas_src>
import functools

import jax
import jax.numpy as jnp
from jax.experimental import pallas as pl
from jax.experimental.pallas import tpu as pltpu


def _pick_lane_tile(hw: int, c: int) -> int:
    """Largest multiple of 128 dividing hw with block bytes capped ~2 MiB."""
    if hw % 128 != 0:
        return hw  # fall back to a full-row block (equals full array dim)
    c_pad = ((c + 7) // 8) * 8
    max_t = max(128, (2 * 1024 * 1024) // (c_pad * 4))
    t = (min(hw, max_t, 4096) // 128) * 128
    while t >= 128 and hw % t != 0:
        t -= 128
    return t if t >= 128 else hw


def _actnorm_stats_kernel(x_ref, bias_ref, logs_ref, mult_ref,
                          sum_acc, sq_acc, *, scale, eps, total):
    """Pass 1: accumulate per-channel sum / sumsq; finalize bias/logs/mult."""
    n = pl.program_id(0)
    g = pl.program_id(1)

    @pl.when(jnp.logical_and(n == 0, g == 0))
    def _init():
        sum_acc[...] = jnp.zeros_like(sum_acc)
        sq_acc[...] = jnp.zeros_like(sq_acc)

    x = x_ref[0]                       # (C, T) f32
    sum_acc[...] += x                  # pure VPU adds; no per-tile XLU reduce
    sq_acc[...] += x * x

    @pl.when(jnp.logical_and(n == pl.num_programs(0) - 1,
                             g == pl.num_programs(1) - 1))
    def _finalize():
        s = jnp.sum(sum_acc[...], axis=1, keepdims=True)    # (C, 1), one reduce
        ss = jnp.sum(sq_acc[...], axis=1, keepdims=True)    # (C, 1)
        mean = s * (1.0 / total)
        var = jnp.maximum(ss * (1.0 / total) - mean * mean, 0.0)
        mult = scale / (jnp.sqrt(var) + eps)
        bias_ref[...] = -mean
        logs_ref[...] = jnp.log(mult)
        mult_ref[...] = mult


def _actnorm_apply_kernel(x_ref, bias_ref, mult_ref, y_ref):
    """Pass 2: y = (x + bias) * mult  (fully elementwise, parallel grid)."""
    y_ref[...] = (x_ref[...] + bias_ref[...]) * mult_ref[...]


def actnorm_forward(x, ldj=None, *, scale=1.0, eps=1e-6):
    """ActNorm forward on an un-initialized module in training mode.

    x: (N, C, H, W) float32.  Returns (y, ldj, bias, logs), with bias/logs the
    (1, C, 1, 1) parameters from the data-dependent initialization."""
    N, C, H, W = x.shape
    HW = H * W
    x3 = x.reshape(N, C, HW).astype(jnp.float32)   # free, contiguous reshape

    T = _pick_lane_tile(HW, C)
    G = HW // T
    grid = (N, G)

    x_spec = pl.BlockSpec((1, C, T), lambda n, g: (n, 0, g))
    cvec_spec = pl.BlockSpec((C, 1), lambda n, g: (0, 0))

    vmem_limit = 32 * 1024 * 1024
    cp_stats = pltpu.CompilerParams(
        dimension_semantics=("arbitrary", "arbitrary"),
        vmem_limit_bytes=vmem_limit)
    cp_apply = pltpu.CompilerParams(
        dimension_semantics=("parallel", "parallel"),
        vmem_limit_bytes=vmem_limit)

    stats_kernel = functools.partial(
        _actnorm_stats_kernel,
        scale=float(scale), eps=float(eps), total=float(N * HW))

    bias2, logs2, mult2 = pl.pallas_call(
        stats_kernel,
        grid=grid,
        in_specs=[x_spec],
        out_specs=(cvec_spec, cvec_spec, cvec_spec),
        out_shape=(
            jax.ShapeDtypeStruct((C, 1), jnp.float32),
            jax.ShapeDtypeStruct((C, 1), jnp.float32),
            jax.ShapeDtypeStruct((C, 1), jnp.float32),
        ),
        scratch_shapes=[pltpu.VMEM((C, T), jnp.float32),
                        pltpu.VMEM((C, T), jnp.float32)],
        compiler_params=cp_stats,
    )(x3)

    y3 = pl.pallas_call(
        _actnorm_apply_kernel,
        grid=grid,
        in_specs=[x_spec, cvec_spec, cvec_spec],
        out_specs=x_spec,
        out_shape=jax.ShapeDtypeStruct((N, C, HW), jnp.float32),
        compiler_params=cp_apply,
    )(x3, bias2, mult2)

    y = y3.reshape(N, C, H, W)
    bias = bias2.reshape(1, C, 1, 1)
    logs = logs2.reshape(1, C, 1, 1)
    if ldj is not None:
        ldj = ldj + jnp.sum(logs) * H * W
    return y, ldj, bias, logs


def _actnorm_ref(x, ldj, scale=1.0, eps=1e-6):
    """Pure-JAX reference matching the PyTorch module."""
    mean = jnp.mean(x, axis=(0, 2, 3), keepdims=True)
    bias = -mean
    xc = x + bias
    v = jnp.mean(xc * xc, axis=(0, 2, 3), keepdims=True)
    logs = jnp.log(scale / (jnp.sqrt(v) + eps))
    y = xc * jnp.exp(logs)
    ldj = ldj + jnp.sum(logs) * x.shape[2] * x.shape[3]
    return y, ldj, bias, logs


if __name__ == "__main__":
    key = jax.random.PRNGKey(0)
    N, C, H, W = 2, 4, 16, 16

    x = jax.random.normal(key, (N, C, H, W), dtype=jnp.float32) * 2.0 + 0.5
    sldj = jnp.zeros((N,), jnp.float32)

    y, ldj, bias, logs = actnorm_forward(x, sldj, scale=1.0)
    y = jax.block_until_ready(y)
    ldj = jax.block_until_ready(ldj)

    y_ref, ldj_ref, bias_ref, logs_ref = _actnorm_ref(x, sldj)
    assert jnp.allclose(y, y_ref, atol=1e-4, rtol=1e-5)
    assert jnp.allclose(ldj, ldj_ref, atol=1e-3, rtol=1e-4)
    assert jnp.allclose(bias, bias_ref, atol=1e-5, rtol=1e-5)
    assert jnp.allclose(logs, logs_ref, atol=1e-4, rtol=1e-5)

    print("KERNEL_OK")
</pallas_src>

<mosaic_0001>
module attributes {stable_mosaic.version = 11 : i64} {
  func.func @_actnorm_stats_kernel(%arg0: i32, %arg1: i32, %arg2: memref<1x4x256xf32, #tpu.memory_space<vmem>>, %arg3: memref<4x1xf32, #tpu.memory_space<vmem>>, %arg4: memref<4x1xf32, #tpu.memory_space<vmem>>, %arg5: memref<4x1xf32, #tpu.memory_space<vmem>>, %arg6: memref<4x256xf32, #tpu.memory_space<vmem>>, %arg7: memref<4x256xf32, #tpu.memory_space<vmem>>) attributes {dimension_semantics = [#tpu.dimension_semantics<arbitrary>, #tpu.dimension_semantics<arbitrary>], iteration_bounds = array<i64: 2, 1>, scalar_prefetch = 0 : i64, scratch_operands = 2 : i64, tpu.core_type = #tpu.core_type<tc>, window_params = [{transform_indices = @transform_0, window_bounds = array<i64: 1, 4, 256>}, {pipeline_mode = #tpu.pipeline_mode<synchronous>, transform_indices = @transform_1, window_bounds = array<i64: 4, 1>}, {pipeline_mode = #tpu.pipeline_mode<synchronous>, transform_indices = @transform_2, window_bounds = array<i64: 4, 1>}, {pipeline_mode = #tpu.pipeline_mode<synchronous>, transform_indices = @transform_3, window_bounds = array<i64: 4, 1>}]} {
    %c0_i32 = arith.constant 0 : i32
    %0 = arith.cmpi eq, %arg0, %c0_i32 : i32
    %c0_i32_0 = arith.constant 0 : i32
    %1 = arith.cmpi eq, %arg1, %c0_i32_0 : i32
    %2 = arith.andi %0, %1 : i1
    %3 = arith.extui %2 : i1 to i32
    %c0_i32_1 = arith.constant 0 : i32
    %4 = arith.cmpi ne, %3, %c0_i32_1 : i32
    scf.if %4 {
      %cst = arith.constant 0.000000e+00 : f32
      %19 = vector.broadcast %cst : f32 to vector<4x256xf32>
      %c0_14 = arith.constant 0 : index
      %c0_15 = arith.constant 0 : index
      %20 = vector.load %arg6[%c0_14, %c0_15] : memref<4x256xf32, #tpu.memory_space<vmem>>, vector<4x256xf32>
      tpu.vector_store %arg6[%c0_14, %c0_15], %19 {strides = array<i32>} : memref<4x256xf32, #tpu.memory_space<vmem>>, vector<4x256xf32>,
      %cst_16 = arith.constant 0.000000e+00 : f32
      %21 = vector.broadcast %cst_16 : f32 to vector<4x256xf32>
      %c0_17 = arith.constant 0 : index
      %c0_18 = arith.constant 0 : index
      %22 = vector.load %arg7[%c0_17, %c0_18] : memref<4x256xf32, #tpu.memory_space<vmem>>, vector<4x256xf32>
      tpu.vector_store %arg7[%c0_17, %c0_18], %21 {strides = array<i32>} : memref<4x256xf32, #tpu.memory_space<vmem>>, vector<4x256xf32>,
    } else {
    }
    %c0 = arith.constant 0 : index
    %c0_2 = arith.constant 0 : index
    %c0_3 = arith.constant 0 : index
    %5 = vector.load %arg2[%c0, %c0_2, %c0_3] : memref<1x4x256xf32, #tpu.memory_space<vmem>>, vector<1x4x256xf32>
    %6 = vector.shape_cast %5 : vector<1x4x256xf32> to vector<4x256xf32>
    %c0_4 = arith.constant 0 : index
    %c0_5 = arith.constant 0 : index
    %7 = vector.load %arg6[%c0_4, %c0_5] : memref<4x256xf32, #tpu.memory_space<vmem>>, vector<4x256xf32>
    %8 = arith.addf %7, %6 : vector<4x256xf32>
    %c0_6 = arith.constant 0 : index
    %c0_7 = arith.constant 0 : index
    %9 = vector.load %arg6[%c0_6, %c0_7] : memref<4x256xf32, #tpu.memory_space<vmem>>, vector<4x256xf32>
    tpu.vector_store %arg6[%c0_6, %c0_7], %8 {strides = array<i32>} : memref<4x256xf32, #tpu.memory_space<vmem>>, vector<4x256xf32>,
    %c0_8 = arith.constant 0 : index
    %c0_9 = arith.constant 0 : index
    %10 = vector.load %arg7[%c0_8, %c0_9] : memref<4x256xf32, #tpu.memory_space<vmem>>, vector<4x256xf32>
    %11 = arith.mulf %6, %6 : vector<4x256xf32>
    %12 = arith.addf %10, %11 : vector<4x256xf32>
    %c0_10 = arith.constant 0 : index
    %c0_11 = arith.constant 0 : index
    %13 = vector.load %arg7[%c0_10, %c0_11] : memref<4x256xf32, #tpu.memory_space<vmem>>, vector<4x256xf32>
    tpu.vector_store %arg7[%c0_10, %c0_11], %12 {strides = array<i32>} : memref<4x256xf32, #tpu.memory_space<vmem>>, vector<4x256xf32>,
    %c1_i32 = arith.constant 1 : i32
    %14 = arith.cmpi eq, %arg0, %c1_i32 : i32
    %c0_i32_12 = arith.constant 0 : i32
    %15 = arith.cmpi eq, %arg1, %c0_i32_12 : i32
    %16 = arith.andi %14, %15 : i1
    %17 = arith.extui %16 : i1 to i32
    %c0_i32_13 = arith.constant 0 : i32
    %18 = arith.cmpi ne, %17, %c0_i32_13 : i32
    scf.if %18 {
      %c0_14 = arith.constant 0 : index
      %c0_15 = arith.constant 0 : index
      %19 = vector.load %arg6[%c0_14, %c0_15] : memref<4x256xf32, #tpu.memory_space<vmem>>, vector<4x256xf32>
      %cst = arith.constant dense<0.000000e+00> : vector<4xf32>
      %20 = vector.multi_reduction <add>, %19, %cst [1] : vector<4x256xf32> to vector<4xf32>
      %21 = vector.shape_cast %20 : vector<4xf32> to vector<4x1xf32>
      %c0_16 = arith.constant 0 : index
      %c0_17 = arith.constant 0 : index
      %22 = vector.load %arg7[%c0_16, %c0_17] : memref<4x256xf32, #tpu.memory_space<vmem>>, vector<4x256xf32>
      %cst_18 = arith.constant dense<0.000000e+00> : vector<4xf32>
      %23 = vector.multi_reduction <add>, %22, %cst_18 [1] : vector<4x256xf32> to vector<4xf32>
      %24 = vector.shape_cast %23 : vector<4xf32> to vector<4x1xf32>
      %cst_19 = arith.constant 0.001953125 : f32
      %25 = vector.broadcast %cst_19 : f32 to vector<4x1xf32>
      %26 = arith.mulf %21, %25 : vector<4x1xf32>
      %cst_20 = arith.constant 0.001953125 : f32
      %27 = vector.broadcast %cst_20 : f32 to vector<4x1xf32>
      %28 = arith.mulf %24, %27 : vector<4x1xf32>
      %29 = arith.mulf %26, %26 : vector<4x1xf32>
      %30 = arith.subf %28, %29 : vector<4x1xf32>
      %cst_21 = arith.constant 0.000000e+00 : f32
      %31 = vector.broadcast %cst_21 : f32 to vector<4x1xf32>
      %32 = arith.maximumf %30, %31 : vector<4x1xf32>
      %33 = math.sqrt %32 : vector<4x1xf32>
      %cst_22 = arith.constant 9.99999997E-7 : f32
      %34 = vector.broadcast %cst_22 : f32 to vector<4x1xf32>
      %35 = arith.addf %33, %34 : vector<4x1xf32>
      %cst_23 = arith.constant 1.000000e+00 : f32
      %36 = vector.broadcast %cst_23 : f32 to vector<4x1xf32>
      %37 = arith.divf %36, %35 : vector<4x1xf32>
      %cst_24 = arith.constant 0.000000e+00 : f32
      %38 = vector.broadcast %cst_24 : f32 to vector<4x1xf32>
      %39 = arith.subf %38, %26 : vector<4x1xf32>
      %c0_25 = arith.constant 0 : index
      %c0_26 = arith.constant 0 : index
      %40 = vector.load %arg3[%c0_25, %c0_26] : memref<4x1xf32, #tpu.memory_space<vmem>>, vector<4x1xf32>
      tpu.vector_store %arg3[%c0_25, %c0_26], %39 {strides = array<i32>} : memref<4x1xf32, #tpu.memory_space<vmem>>, vector<4x1xf32>,
      %41 = math.log %37 : vector<4x1xf32>
      %c0_27 = arith.constant 0 : index
      %c0_28 = arith.constant 0 : index
      %42 = vector.load %arg4[%c0_27, %c0_28] : memref<4x1xf32, #tpu.memory_space<vmem>>, vector<4x1xf32>
      tpu.vector_store %arg4[%c0_27, %c0_28], %41 {strides = array<i32>} : memref<4x1xf32, #tpu.memory_space<vmem>>, vector<4x1xf32>,
      %c0_29 = arith.constant 0 : index
      %c0_30 = arith.constant 0 : index
      %43 = vector.load %arg5[%c0_29, %c0_30] : memref<4x1xf32, #tpu.memory_space<vmem>>, vector<4x1xf32>
      tpu.vector_store %arg5[%c0_29, %c0_30], %37 {strides = array<i32>} : memref<4x1xf32, #tpu.memory_space<vmem>>, vector<4x1xf32>,
    } else {
    }
    return
  }
  func.func @transform_0(%arg0: i32, %arg1: i32) -> (i32, i32, i32) {
    %c0_i32 = arith.constant 0 : i32
    %c0_i32_0 = arith.constant 0 : i32
    return %arg0, %c0_i32, %arg1 : i32, i32, i32
  }
  func.func @transform_1(%arg0: i32, %arg1: i32) -> (i32, i32) {
    %c0_i32 = arith.constant 0 : i32
    %c0_i32_0 = arith.constant 0 : i32
    %c0_i32_1 = arith.constant 0 : i32
    return %c0_i32, %c0_i32_0 : i32, i32
  }
  func.func @transform_2(%arg0: i32, %arg1: i32) -> (i32, i32) {
    %c0_i32 = arith.constant 0 : i32
    %c0_i32_0 = arith.constant 0 : i32
    %c0_i32_1 = arith.constant 0 : i32
    return %c0_i32, %c0_i32_0 : i32, i32
  }
  func.func @transform_3(%arg0: i32, %arg1: i32) -> (i32, i32) {
    %c0_i32 = arith.constant 0 : i32
    %c0_i32_0 = arith.constant 0 : i32
    %c0_i32_1 = arith.constant 0 : i32
    return %c0_i32, %c0_i32_0 : i32, i32
  }
}

</mosaic_0001>

<bundles_post_ra>
// kernel: tpu_custom_call.1
= control target key start
LH: loop header
LB: loop body
LE: loop exit
PB: predicated region body
PF: predicated region fallthrough
CT: control target
= control target key end

     0   :  { %9 = vsyncpa [#allocation5], 0  ;;  %s614_s0 = inlined_call_operand.hbm [shape: f32[2,4,256], index: 0, kind: input, shape index: {}]   ;;  %s615_s1 = inlined_call_operand.vmem [shape: f32[4,1], index: 1, kind: output, shape index: {0}]   ;;  %s616_s2 = inlined_call_operand.vmem [shape: f32[4,1], index: 2, kind: output, shape index: {1}]   ;;  %s617_s3 = inlined_call_operand.vmem [shape: f32[4,1], index: 3, kind: output, shape index: {2}]  }
   0x1   :  { %11 = vsyncpa [#allocation5 + $0x1], 0  ;;  %s517_s12 = smov 0   ;;  %s519_s13 = smov 0  }
   0x2   :  { %s521_s14 = smov 0   ;;  %s523_s15 = smov 0  }
   0x3   :  { %s525_s16 = smov 0   ;;  %s527_s17 = smov 0  }
   0x4 LB: > { %s337_s18 = sadd.s32 4294967295, %s494_s17   ;;  %s29_s19 = sadd.s32 1, %s490_s16  ;;  %s494_s17 = sphi %s527_s17, %s17_s17   ;;  %s490_s16 = sphi %s525_s16, %s624_s16   ;;  %s486_s15 = sphi %s523_s15, %s623_s15   ;;  %s482_s14 = sphi %s521_s14, %s622_s14   ;;  %s478_s13 = sphi %s519_s13, %s621_s13   ;;  %s474_s12 = sphi %s517_s12, %s620_s12  }
   0x5   : > { %p31_p0 = scmp.ge.s32.totalorder %s29_s19, 2  ;;  %s38_s20 = sadd.s32 1, %s482_s14 }
   0x6   : > { %p45_p1 = scmp.ne.s32.totalorder %s482_s14, %s478_s13  ;;  %p46_p2 = scmp.eq.s32.totalorder %s494_s17, 0 }
   0x7   : > { %s626_s19 = smov (%p31_p0, %s29_s19), 0  ;;  %p51_p4 = scmp.ne.s32.totalorder %s478_s13, %s474_s12 }
   0x8   : > { %p553_p3 = por %p46_p2, %p45_p1  ;;  %s33_s22 = ssub.s32 %s490_s16, %s626_s19 }
   0x9   : > { %p52_p5 = scmp.eq.s32.totalorder %s337_s18, 0  ;;  %p36_p6 = scmp.eq.s32.totalorder %s33_s22, 0 }
   0xa   : > { %p358_p8 = scmp.lt.s32.totalorder %s494_s17, 2  ;;  %s138_s25 = sand.u32 1, %s482_s14  }
   0xb   : > { %p560_p7 = por %p52_p5, %p51_p4  ;;  %s349_s26 = sshll.u32 %s490_s16, 3 }
   0xc   : > { %s566_s24 = scalar_select %p36_p6, %s482_s14, %s38_s20  }
   0xd   : > { %s340_s27 = sshll.u32 %s138_s25, 3  ;;  %s149_s30 = scalar_lea.hbm %s614_s0, %s349_s26 }
   0xe   : > { %s151_s4 = sshll.u32 %s149_s30, 4  ;;  %s142_s5 = scalar_lea.vmem [#allocation4], %s340_s27  ;;  %s152_s4 = int_to_ptr.hbm [resolvable:$true] %s151_s4 }
   0xf   : > { %s153_s6 = sshll.u32 %s142_s5, 4  ;;  %p355_p9 = pnand %p358_p8, %p553_p3  ;;  %s154_s6 = int_to_ptr.vmem [resolvable:$true] %s153_s6 }
  0x10   : > { %p343_p10 = scmp.ge.s32.totalorder %s494_s17, 1  ;;  %p158_p11 = scmp.lt.s32.totalorder %s494_s17, 3 }
  0x11   : > { %s139_s7 = scalar_lea.sflag [#allocation5], %s138_s25 }
  0x12   : > { %357 = dma.hbm_to_vmem [thread:$0]  (!%p355_p9), %s152_s4, 128, %s154_s6, %s139_s7  }
  0x13   : > { %p159_p12 = pnand %p343_p10, %p158_p11 }
  0x14   : > { %s164_s8 = sand.u32 (!%p159_p12), 1, %s478_s13  }
  0x15   : > { %162 = sbr.rel (%p159_p12) target bundleno = 238 (0xee), region = 24  ;;  %s344_s9 = sshll.u32 (!%p159_p12), %s164_s8, 3 }
  0x16   : > { %s165_s10 = scalar_lea.sflag (!%p159_p12), [#allocation5], %s164_s8  ;;  %s168_s11 = scalar_lea.vmem (!%p159_p12), [#allocation4], %s344_s9 }
  0x1a   : > { %469 = dma.done.wait (%p560_p7), %s165_s10, 128  }
  0x1b   : > { %471 = vsyncadd (%p560_p7), %s165_s10, 4294967168  ;;  %p188_p13 = scmp.eq.s32.totalorder %s486_s15, 0 }
  0x1c   : > { %v496_v0 = vmov (%p188_p13), 0.0  }
  0x1d   : > { %193 = sbr.rel (!%p188_p13) target bundleno = 34 (0x22), region = 32  ;;  %194 = vst [vmem:[#allocation2] sm:$0xff] (%p188_p13), %v496_v0 }
  0x1e   : > { %195 = vst [vmem:[#allocation3] sm:$0xff] (%p188_p13), %v496_v0 }
  0x22 PF: > { %v196_v1 = vld [vmem:[%s168_s11] sm:$0xff]  ;;  %p204_p0 = scmp.eq.s32.totalorder %s486_s15, 1 }
  0x23   : > { %v201_v5 = vmul.f32 %v196_v1, %v196_v1  ;;  %vm216_vm0 = vcmask (%p204_p0), 1043456   ;;  %vm268_vm1 = vcmask (%p204_p0), 3072  }
  0x24   : > { %v197_v2 = vld [vmem:[#allocation2] sm:$0xff]  ;;  %208 = sbr.rel (!%p204_p0) target bundleno = 238 (0xee), region = 36 }
  0x25   : > { %v200_v3 = vld [vmem:[#allocation3] sm:$0xff]  ;;  %v198_v4 = vadd.f32 %v197_v2, %v196_v1 }
  0x26   : > { %v202_v6 = vadd.f32 %v201_v5, %v200_v3 }
  0x27   : > { %199 = vst [vmem:[#allocation2] sm:$0xff] %v198_v4 }
  0x28   : > { %203 = vst [vmem:[#allocation3] sm:$0xff] %v202_v6 }
  0x2e   : > { %v209_v7 = vld [vmem:[#allocation2] sm:$0xff] }
  0x2f   : > { %211 = vst [vmem:[#allocation1] ss:$2 sm:$0xff] %v209_v7  ;;  %v222_v8 = vld [vmem:[#allocation3] sm:$0xff] }
  0x36   : > { %v212_v9 = vld.sshfl [vmem:[#allocation1] sm:$0xff pattern:$0x75316420]  ;;  %v213_v10 = vld.sshfl [vmem:[#allocation1 + $0x8] sm:$0xff pattern:$0x75316420] }
  0x37   : > { %v217_v11 = vsel %vm216_vm0, %v212_v9, 0.0  ;;  %v218_v12 = vsel %vm216_vm0, %v213_v10, 0.0  ;;  %224 = vst [vmem:[#allocation1] ss:$2 sm:$0xff] %v222_v8 }
  0x38   : > { %v219_v13 = vadd.f32 %v218_v12, %v217_v11 }
  0x3a   : > { %220 = vadd.xlane.f32.xlu0 %v219_v13 }
  0x3e   : > { %v225_v14 = vld.sshfl [vmem:[#allocation1] sm:$0xff pattern:$0x75316420]  ;;  %v226_v15 = vld.sshfl [vmem:[#allocation1 + $0x8] sm:$0xff pattern:$0x75316420] }
  0x3f   : > { %v229_v16 = vsel %vm216_vm0, %v225_v14, 0.0  ;;  %v230_v17 = vsel %vm216_vm0, %v226_v15, 0.0 }
  0x40   : > { %v231_v18 = vadd.f32 %v230_v17, %v229_v16 }
  0x42   : > { %232 = vadd.xlane.f32.xlu0 %v231_v18 }
  0xad   : > { %v221_v19 = vpop.xlane.xlu0 %220 }
  0xae   : > { %v234_v20 = vmul.f32 0.001953125, %v221_v19 }
  0xb0   : > { %v267_v21 = vsub.f32 0.0, %v234_v20  ;;  %v236_v23 = vmul.f32 %v234_v20, %v234_v20 }
  0xb2   : > { %269 = vst.msk [vmem:[%s615_s1] sm:$0xf] %vm268_vm1, %v267_v21 }
  0xb5   : > { %v233_v22 = vpop.xlane.xlu0 %232 }
  0xb6   : > { %v235_v24 = vmul.f32 0.001953125, %v233_v22 }
  0xb8   : > { %v237_v25 = vsub.f32 %v235_v24, %v236_v23 }
  0xba   : > { %v238_v26 = vmax.f32 %v237_v25, 0.0 }
  0xbc   : > { %408 = vrsqrt.f32 %v238_v26  ;;  %vm246_vm2 = vcmp.eq.f32.partialorder %v238_v26, inf  ;;  %v249_v34 = vand.u32 2147483648, %v238_v26  ;;  %vm248_vm3 = vcmp.eq.f32.partialorder %v238_v26, 0.0 }
  0xc2   : > { %v409_v27 = vpop.eup %408 }
  0xc3   : > { %v240_v28 = vmul.f32 %v409_v27, %v238_v26 }
  0xc5   : > { %v241_v29 = vmul.f32 %v409_v27, %v240_v28 }
  0xc7   : > { %v242_v30 = vmul.f32 0.5, %v241_v29 }
  0xc9   : > { %v243_v31 = vsub.f32 1.5, %v242_v30 }
  0xcb   : > { %v244_v32 = vmul.f32 %v409_v27, %v243_v31 }
  0xcd   : > { %v245_v33 = vmul.f32 %v244_v32, %v238_v26 }
  0xcf   : > { %v247_v35 = vsel %vm246_vm2, %v238_v26, %v245_v33 }
  0xd0   : > { %v250_v36 = vsel %vm248_vm3, %v249_v34, %v247_v35 }
  0xd1   : > { %v251_v37 = vadd.f32 1e-06, %v250_v36 }
  0xd3   : > { %410 = vrcp.f32 %v251_v37  ;;  %v263_v41 = vand.u32 2147483648, %v251_v37  ;;  %v261_v43 = vand.u32 2147483647, %v251_v37  ;;  %vm257_vm5 = vweird.f32 %v251_v37 }
  0xd5   : > { %v264_v45 = vor.u32 1.1754944e-38, %v263_v41  ;;  %vm262_vm7 = vcmp.eq.f32.partialorder %v261_v43, 8.507059e+37 }
  0xd9   : > { %v411_v38 = vpop.eup %410 }
  0xda   : > { %v253_v39 = vmul.f32 %v411_v38, %v251_v37  ;;  %vm258_vm4 = vweird.f32 %v411_v38 }
  0xdb   : > { %vm259_vm6 = vmor %vm257_vm5, %vm258_vm4 }
  0xdc   : > { %v254_v40 = vsub.f32 1.0, %v253_v39 }
  0xde   : > { %v255_v42 = vmul.f32 %v411_v38, %v254_v40 }
  0xe0   : > { %v256_v44 = vadd.f32 %v411_v38, %v255_v42 }
  0xe2   : > { %v260_v46 = vsel %vm259_vm6, %v411_v38, %v256_v44 }
  0xe3   : > { %v265_v47 = vsel %vm262_vm7, %v264_v45, %v260_v46 }
  0xe4   : > { %412 = vlog2.f32 %v265_v47  ;;  %273 = vst.msk [vmem:[%s617_s3] sm:$0xf] %vm268_vm1, %v265_v47 }
  0xea   : > { %v413_v48 = vpop.eup %412 }
  0xeb   : > { %v271_v49 = vmul.f32 0.6931472, %v413_v48 }
  0xed   : > { %272 = vst.msk [vmem:[%s616_s2] sm:$0xf] %vm268_vm1, %v271_v49 }
  0xee PF: > { %s17_s17 = sadd.s32 1, %s494_s17   ;;  %s620_s12 = smov %s478_s13 }
  0xef   : > { %p14_p1 = scmp.ge.s32.totalorder %s17_s17, 4   ;;  %s621_s13 = smov %s482_s14 }
  0xf0   : > { %s622_s14 = smov %s566_s24  ;;  %s623_s15 = smov %s490_s16 }
  0xf1   : > { %s624_s16 = smov %s626_s19  ;;  %16 = sbr.rel (!%p14_p1) target bundleno = 4 (0x4), region = 84 }
  0xf6   :  { %297 = vsyncpa [#allocation5], 1 }
  0xf7   :  { %299 = vsyncpa [#allocation5 + $0x1], 1 }

</bundles_post_ra>
